<compile_context>
chip_gen: v7x
topology: tpu7x:2x2x1
jax: 0.10.0
libtpu: 0.0.40
codegen_flags: <defaults>
</compile_context>

<pallas_src>
import numpy as np
import jax
import jax.numpy as jnp
from jax.experimental import pallas as pl
from jax.experimental.pallas import tpu as pltpu


# ---------------------------------------------------------------------------
# Parameter / buffer construction (mirrors VertexJointSelector.__init__)
# ---------------------------------------------------------------------------
def build_extra_joints_idxs(vertex_ids, use_hands=True, use_feet_keypoints=True):
    extra_joints_idxs = np.array([], dtype=np.int64)
    face_keyp_idxs = np.array(
        [vertex_ids['nose'], vertex_ids['reye'], vertex_ids['leye'],
         vertex_ids['rear'], vertex_ids['lear']], dtype=np.int64)
    extra_joints_idxs = np.concatenate([extra_joints_idxs, face_keyp_idxs])
    if use_feet_keypoints:
        feet_keyp_idxs = np.array(
            [vertex_ids['LBigToe'], vertex_ids['LSmallToe'], vertex_ids['LHeel'],
             vertex_ids['RBigToe'], vertex_ids['RSmallToe'], vertex_ids['RHeel']],
            dtype=np.int32)
        extra_joints_idxs = np.concatenate([extra_joints_idxs, feet_keyp_idxs])
    if use_hands:
        tip_names = ['thumb', 'index', 'middle', 'ring', 'pinky']
        tips_idxs = []
        for hand_id in ['l', 'r']:
            for tip_name in tip_names:
                tips_idxs.append(vertex_ids[hand_id + tip_name])
        extra_joints_idxs = np.concatenate([extra_joints_idxs, tips_idxs])
    return extra_joints_idxs.astype(np.int64)


# ---------------------------------------------------------------------------
# Pallas kernel: static-index gather on the flattened (lane-dense) layout
# ---------------------------------------------------------------------------
def _make_kernel(idxs, C):
    """idxs: tuple of static Python ints (vertex indices), C: coords per point."""

    def kernel(joints_ref, verts_ref, out_ref):
        # joints_ref: (Bblk, J*C)   verts_ref: (Bblk, V*C)   out_ref: (Bblk, (J+K)*C)
        v = verts_ref[...]
        parts = [joints_ref[...].astype(out_ref.dtype)]
        for i in idxs:  # static lane slices; unrolled at trace time (K ~ 21)
            parts.append(v[:, i * C:(i + 1) * C].astype(out_ref.dtype))
        # Single lane-dense full-block store.
        out_ref[...] = jnp.concatenate(parts, axis=-1)

    return kernel


def _pick_batch_block(B):
    # Second-to-last block dim must be a multiple of 8 or equal the full dim.
    for cand in (64, 32, 16, 8):
        if B % cand == 0:
            return cand
    return B


def vertex_joint_selector(vertices, joints, extra_joints_idxs):
    """Pallas implementation of VertexJointSelector.forward."""
    B, V, C = vertices.shape
    Bj, J, Cj = joints.shape
    assert B == Bj and C == Cj
    idxs = tuple(int(i) for i in np.asarray(extra_joints_idxs))
    K = len(idxs)

    # Free, contiguous reshapes: put (index * coord) on the lane axis.
    joints_flat = joints.reshape(B, J * C)
    verts_flat = vertices.reshape(B, V * C)

    Bblk = _pick_batch_block(B)
    grid = (B // Bblk,)

    out_flat = pl.pallas_call(
        _make_kernel(idxs, C),
        out_shape=jax.ShapeDtypeStruct((B, (J + K) * C), joints.dtype),
        grid_spec=pltpu.PrefetchScalarGridSpec(
            num_scalar_prefetch=0,
            grid=grid,
            in_specs=[
                pl.BlockSpec((Bblk, J * C), lambda b: (b, 0)),   # joints (flat)
                pl.BlockSpec((Bblk, V * C), lambda b: (b, 0)),   # vertices (flat)
            ],
            out_specs=pl.BlockSpec((Bblk, (J + K) * C), lambda b: (b, 0)),
        ),
        compiler_params=pltpu.CompilerParams(
            dimension_semantics=("parallel",)),
    )(joints_flat, verts_flat)

    return out_flat.reshape(B, J + K, C)


# ---------------------------------------------------------------------------
# Demo / self-check
# ---------------------------------------------------------------------------
if __name__ == "__main__":
    B, V, J, C = 2, 128, 24, 3

    # Deterministic synthetic vertex-id table (21 distinct ids in [0, V)).
    names = ['nose', 'reye', 'leye', 'rear', 'lear',
             'LBigToe', 'LSmallToe', 'LHeel', 'RBigToe', 'RSmallToe', 'RHeel',
             'lthumb', 'lindex', 'lmiddle', 'lring', 'lpinky',
             'rthumb', 'rindex', 'rmiddle', 'rring', 'rpinky']
    vertex_ids = {name: (7 + 5 * i) % V for i, name in enumerate(names)}
    extra_joints_idxs = build_extra_joints_idxs(vertex_ids)

    key = jax.random.PRNGKey(0)
    k1, k2 = jax.random.split(key)
    vertices = jax.random.normal(k1, (B, V, C), dtype=jnp.float32)
    joints = jax.random.normal(k2, (B, J, C), dtype=jnp.float32)

    out = vertex_joint_selector(vertices, joints, extra_joints_idxs)
    out = jax.block_until_ready(out)

    # Reference (plain JAX) check of forward semantics.
    extra_ref = jnp.take(vertices, jnp.asarray(extra_joints_idxs, dtype=jnp.int32),
                         axis=1)
    ref = jnp.concatenate([joints, extra_ref], axis=1)
    np.testing.assert_allclose(np.asarray(out), np.asarray(ref), rtol=1e-6, atol=1e-6)

    print("KERNEL_OK")
</pallas_src>

<mosaic_0001>
module attributes {stable_mosaic.version = 11 : i64} {
  func.func @kernel(%arg0: i32, %arg1: memref<2x72xf32, #tpu.memory_space<vmem>>, %arg2: memref<2x384xf32, #tpu.memory_space<vmem>>, %arg3: memref<2x135xf32, #tpu.memory_space<vmem>>) attributes {dimension_semantics = [#tpu.dimension_semantics<parallel>], iteration_bounds = array<i64: 1>, scalar_prefetch = 0 : i64, scratch_operands = 0 : i64, tpu.core_type = #tpu.core_type<tc>, window_params = [{transform_indices = @transform_0, window_bounds = array<i64: 2, 72>}, {transform_indices = @transform_1, window_bounds = array<i64: 2, 384>}, {transform_indices = @transform_2, window_bounds = array<i64: 2, 135>}]} {
    %c0 = arith.constant 0 : index
    %c0_0 = arith.constant 0 : index
    %0 = vector.load %arg2[%c0, %c0_0] : memref<2x384xf32, #tpu.memory_space<vmem>>, vector<2x384xf32>
    %c0_1 = arith.constant 0 : index
    %c0_2 = arith.constant 0 : index
    %1 = vector.load %arg1[%c0_1, %c0_2] : memref<2x72xf32, #tpu.memory_space<vmem>>, vector<2x72xf32>
    %2 = vector.extract_strided_slice %0 {offsets = [0, 21], sizes = [2, 3], strides = [1, 1]} : vector<2x384xf32> to vector<2x3xf32>
    %3 = vector.extract_strided_slice %0 {offsets = [0, 36], sizes = [2, 3], strides = [1, 1]} : vector<2x384xf32> to vector<2x3xf32>
    %4 = vector.extract_strided_slice %0 {offsets = [0, 51], sizes = [2, 3], strides = [1, 1]} : vector<2x384xf32> to vector<2x3xf32>
    %5 = vector.extract_strided_slice %0 {offsets = [0, 66], sizes = [2, 3], strides = [1, 1]} : vector<2x384xf32> to vector<2x3xf32>
    %6 = vector.extract_strided_slice %0 {offsets = [0, 81], sizes = [2, 3], strides = [1, 1]} : vector<2x384xf32> to vector<2x3xf32>
    %7 = vector.extract_strided_slice %0 {offsets = [0, 96], sizes = [2, 3], strides = [1, 1]} : vector<2x384xf32> to vector<2x3xf32>
    %8 = vector.extract_strided_slice %0 {offsets = [0, 111], sizes = [2, 3], strides = [1, 1]} : vector<2x384xf32> to vector<2x3xf32>
    %9 = vector.extract_strided_slice %0 {offsets = [0, 126], sizes = [2, 3], strides = [1, 1]} : vector<2x384xf32> to vector<2x3xf32>
    %10 = vector.extract_strided_slice %0 {offsets = [0, 141], sizes = [2, 3], strides = [1, 1]} : vector<2x384xf32> to vector<2x3xf32>
    %11 = vector.extract_strided_slice %0 {offsets = [0, 156], sizes = [2, 3], strides = [1, 1]} : vector<2x384xf32> to vector<2x3xf32>
    %12 = vector.extract_strided_slice %0 {offsets = [0, 171], sizes = [2, 3], strides = [1, 1]} : vector<2x384xf32> to vector<2x3xf32>
    %13 = vector.extract_strided_slice %0 {offsets = [0, 186], sizes = [2, 3], strides = [1, 1]} : vector<2x384xf32> to vector<2x3xf32>
    %14 = vector.extract_strided_slice %0 {offsets = [0, 201], sizes = [2, 3], strides = [1, 1]} : vector<2x384xf32> to vector<2x3xf32>
    %15 = vector.extract_strided_slice %0 {offsets = [0, 216], sizes = [2, 3], strides = [1, 1]} : vector<2x384xf32> to vector<2x3xf32>
    %16 = vector.extract_strided_slice %0 {offsets = [0, 231], sizes = [2, 3], strides = [1, 1]} : vector<2x384xf32> to vector<2x3xf32>
    %17 = vector.extract_strided_slice %0 {offsets = [0, 246], sizes = [2, 3], strides = [1, 1]} : vector<2x384xf32> to vector<2x3xf32>
    %18 = vector.extract_strided_slice %0 {offsets = [0, 261], sizes = [2, 3], strides = [1, 1]} : vector<2x384xf32> to vector<2x3xf32>
    %19 = vector.extract_strided_slice %0 {offsets = [0, 276], sizes = [2, 3], strides = [1, 1]} : vector<2x384xf32> to vector<2x3xf32>
    %20 = vector.extract_strided_slice %0 {offsets = [0, 291], sizes = [2, 3], strides = [1, 1]} : vector<2x384xf32> to vector<2x3xf32>
    %21 = vector.extract_strided_slice %0 {offsets = [0, 306], sizes = [2, 3], strides = [1, 1]} : vector<2x384xf32> to vector<2x3xf32>
    %22 = vector.extract_strided_slice %0 {offsets = [0, 321], sizes = [2, 3], strides = [1, 1]} : vector<2x384xf32> to vector<2x3xf32>
    %23 = tpu.concatenate %1, %2, %3, %4, %5, %6, %7, %8, %9, %10, %11, %12, %13, %14, %15, %16 in 1 : vector<2x72xf32>, vector<2x3xf32>, vector<2x3xf32>, vector<2x3xf32>, vector<2x3xf32>, vector<2x3xf32>, vector<2x3xf32>, vector<2x3xf32>, vector<2x3xf32>, vector<2x3xf32>, vector<2x3xf32>, vector<2x3xf32>, vector<2x3xf32>, vector<2x3xf32>, vector<2x3xf32>, vector<2x3xf32> -> vector<2x117xf32>
    %24 = tpu.concatenate %17, %18, %19, %20, %21, %22 in 1 : vector<2x3xf32>, vector<2x3xf32>, vector<2x3xf32>, vector<2x3xf32>, vector<2x3xf32>, vector<2x3xf32> -> vector<2x18xf32>
    %25 = tpu.concatenate %23, %24 in 1 : vector<2x117xf32>, vector<2x18xf32> -> vector<2x135xf32>
    %c0_3 = arith.constant 0 : index
    %c0_4 = arith.constant 0 : index
    %26 = vector.load %arg3[%c0_3, %c0_4] : memref<2x135xf32, #tpu.memory_space<vmem>>, vector<2x135xf32>
    tpu.vector_store %arg3[%c0_3, %c0_4], %25 {strides = array<i32>} : memref<2x135xf32, #tpu.memory_space<vmem>>, vector<2x135xf32>,
    return
  }
  func.func @transform_0(%arg0: i32) -> (i32, i32) {
    %c0_i32 = arith.constant 0 : i32
    %c0_i32_0 = arith.constant 0 : i32
    return %arg0, %c0_i32 : i32, i32
  }
  func.func @transform_1(%arg0: i32) -> (i32, i32) {
    %c0_i32 = arith.constant 0 : i32
    %c0_i32_0 = arith.constant 0 : i32
    return %arg0, %c0_i32 : i32, i32
  }
  func.func @transform_2(%arg0: i32) -> (i32, i32) {
    %c0_i32 = arith.constant 0 : i32
    %c0_i32_0 = arith.constant 0 : i32
    return %arg0, %c0_i32 : i32, i32
  }
}

</mosaic_0001>

<bundles_post_ra>
// kernel: tpu_custom_call.1
= control target key start
LH: loop header
LB: loop body
LE: loop exit
PB: predicated region body
PF: predicated region fallthrough
CT: control target
= control target key end

     0   :  { %7 = vsyncpa [#allocation3], 0  ;;  %s379_s0 = inlined_call_operand.hbm [shape: f32[2,72], index: 0, kind: input, shape index: {}]   ;;  %s380_s1 = inlined_call_operand.hbm [shape: f32[2,384], index: 1, kind: input, shape index: {}]   ;;  %s381_s2 = inlined_call_operand.hbm [shape: f32[2,135], index: 2, kind: output, shape index: {}]  }
   0x1   :  { %8 = vsyncpa [#allocation6], 0 }
   0x2   :  { %9 = vsyncpa [#allocation4], 0  ;;  %s297_s9 = smov [#allocation2]   ;;  %s298_s11 = smov [#allocation5]  }
   0x3   :  { %s16_s10 = sshll.u32 %s297_s9, 4  ;;  %s26_s12 = sshll.u32 %s298_s11, 4  ;;  %s17_s10 = int_to_ptr.vmem [resolvable:$true] %s16_s10  ;;  %s27_s12 = int_to_ptr.vmem [resolvable:$true] %s26_s12 }
   0x4   :  { %s225_s15 = scalar_lea.hbm %s379_s0, 32 }
   0x5   :  { %p226_p0 = scmp.ne.s32.totalorder %s379_s0, %s225_s15  ;;  %p229_p1 = scmp.lt.u32.totalorder %s225_s15, %s379_s0 }
   0x7   :  { %p231_p2 = pnand %p229_p1, %p226_p0 }
   0x9   :  { %234 = shalt.err (!%p231_p2)
}
   0xa   :  { %s235_s20 = scalar_lea.vmem %s17_s10, 32  ;;  %p240_p4 = scmp.lt.s32.totalorder %s17_s10, %s17_s10 }
   0xb   :  { %p236_p3 = scmp.ne.s32.totalorder %s17_s10, %s235_s20  ;;  %p241_p5 = scmp.lt.s32.totalorder %s235_s20, %s235_s20 }
   0xd   :  { %p242_p6 = por %p241_p5, %p240_p4 }
   0xf   :  { %p243_p7 = pnand %p242_p6, %p236_p3 }
  0x11   :  { %246 = shalt.err (!%p243_p7)
}
  0x12   :  { %19 = dma.hbm_to_vmem [thread:$0]  %s379_s0, 32, %s17_s10, [#allocation3]  }
  0x13   :  { %s247_s25 = scalar_lea.hbm %s380_s1, 96 }
  0x14   :  { %p248_p8 = scmp.ne.s32.totalorder %s380_s1, %s247_s25  ;;  %p251_p9 = scmp.lt.u32.totalorder %s247_s25, %s380_s1 }
  0x16   :  { %p253_p10 = pnand %p251_p9, %p248_p8 }
  0x18   :  { %256 = shalt.err (!%p253_p10)
}
  0x19   :  { %s257_s30 = scalar_lea.vmem %s27_s12, 96  ;;  %p262_p12 = scmp.lt.s32.totalorder %s27_s12, %s27_s12 }
  0x1a   :  { %p258_p11 = scmp.ne.s32.totalorder %s27_s12, %s257_s30  ;;  %p263_p13 = scmp.lt.s32.totalorder %s257_s30, %s257_s30 }
  0x1c   :  { %p264_p0 = por %p263_p13, %p262_p12 }
  0x1e   :  { %p265_p1 = pnand %p264_p0, %p258_p11 }
  0x20   :  { %268 = shalt.err (!%p265_p1)
}
  0x21   :  { %29 = dma.hbm_to_vmem [thread:$0]  %s380_s1, 96, %s27_s12, [#allocation6]  }
  0x22   :  { %291 = dma.done.wait [#allocation3], 32  }
  0x23   :  { %292 = vsyncadd [#allocation3], 4294967264 }
  0x24   :  { %293 = dma.done.wait [#allocation6], 96  }
  0x25   :  { %294 = vsyncadd [#allocation6], 4294967200  ;;  %v42_v0 = vlaneseq  ;;  %v299_v1 = vmov 1983009808   ;;  %v36_v6 = vld [vmem:[#allocation5] sm:$0x3f] }
  0x26   :  { %v40_v2 = vunpack.c.l.s4 %v299_v1  ;;  %v129_v8 = vcombine.high %v36_v6, %v36_v6  ;;  %s300_s4 = smov 10   ;;  %s301_s1 = smov 114   ;;  %vm152_vm0 = vcmask 23552   ;;  %vm154_vm1 = vcmask 48128   ;;  %v37_v23 = vld [vmem:[#allocation2] sm:$0x3] }
  0x27   :  { %v43_v3 = vshrl.u32 %v42_v0, 7  ;;  %s302_s5 = smov 126   ;;  %s303_s6 = smov 102   ;;  %vm156_vm2 = vcmask 72704   ;;  %vm158_vm3 = vcmask 97280   ;;  %vm160_vm4 = vcmask 121856  }
  0x28   :  { %v41_v4 = vunpack.c.0.s8 %v40_v2  ;;  %s304_s7 = smov 90   ;;  %s305_s8 = smov 78   ;;  %vm96_vm5 = vcmask 588800   ;;  %vm98_vm6 = vcmask 613376   ;;  %vm100_vm7 = vcmask 637952  }
  0x29   :  { %s306_s9 = smov 51   ;;  %s307_s10 = smov 39   ;;  %vm102_vm8 = vcmask 662528   ;;  %vm104_vm9 = vcmask 687104   ;;  %vm106_vm10 = vcmask 711680   ;;  %vm108_vm11 = vcmask 736256  }
  0x2a   :  { %v362_v5 = vsub.s32 %v41_v4, %v43_v3  ;;  %s308_s11 = smov 27   ;;  %s309_s12 = smov 15   ;;  %vm72_vm12 = vcmask 777216   ;;  %vm110_vm13 = vcmask 760832   ;;  %vm112_vm14 = vcmask 785408  }
  0x2b   :  { %s310_s13 = smov 3   ;;  %s311_s14 = smov 119   ;;  %vm114_vm15 = vcmask 809984  }
  0x2c   :  { %v45_v7 = vrot.slane %v36_v6, %v362_v5  ;;  %v136_v10 = vrot.slane %v129_v8, %v362_v5  ;;  %s312_s15 = smov 107   ;;  %s313_s16 = smov 95  }
  0x2d   :  { %s314_s17 = smov 83   ;;  %s315_s18 = smov 71  }
  0x2e   :  { %v67_v9 = vcombine.high %v45_v7, %v45_v7  ;;  %140 = vrot.lane.b32.xlu1 %v136_v10, %s301_s1  ;;  %s316_s19 = smov 59   ;;  %s317_s20 = smov 47  }
  0x2f   :  { %s318_s21 = smov 35   ;;  %s319_s22 = smov 23  }
  0x30   :  { %126 = vrot.lane.b32.xlu0 %v67_v9, %s300_s4  ;;  %s320_s23 = smov 11   ;;  %s321_s24 = smov 117  }
  0x31   :  { %s322_s25 = smov [#allocation7]  }
  0x32   :  { %143 = vrot.lane.b32.xlu1 %v136_v10, %s303_s6  ;;  %s188_s26 = sshll.u32 %s322_s25, 4  ;;  %s189_s26 = int_to_ptr.vmem [resolvable:$true] %s188_s26 }
  0x33   :  { %s269_s27 = scalar_lea.vmem %s189_s26, 64  ;;  %p274_p3 = scmp.lt.s32.totalorder %s189_s26, %s189_s26 }
  0x34   :  { %137 = vrot.lane.b32.xlu0 %v136_v10, %s302_s5  ;;  %p270_p2 = scmp.ne.s32.totalorder %s189_s26, %s269_s27  ;;  %p275_p4 = scmp.lt.s32.totalorder %s269_s27, %s269_s27 }
  0x36   :  { %149 = vrot.lane.b32.xlu1 %v136_v10, %s305_s8  ;;  %p276_p5 = por %p275_p4, %p274_p3 }
  0x38   :  { %146 = vrot.lane.b32.xlu0 %v136_v10, %s304_s7  ;;  %p277_p6 = pnand %p276_p5, %p270_p2 }
  0x3a   :  { %49 = vrot.lane.b32.xlu1 %v45_v7, %s307_s10 }
  0x3c   :  { %46 = vrot.lane.b32.xlu0 %v45_v7, %s306_s9 }
  0x3e   :  { %55 = vrot.lane.b32.xlu1 %v45_v7, %s309_s12 }
  0x40   :  { %52 = vrot.lane.b32.xlu0 %v45_v7, %s308_s11 }
  0x42   :  { %61 = vrot.lane.b32.xlu1 %v45_v7, %s311_s14 }
  0x44   :  { %58 = vrot.lane.b32.xlu0 %v45_v7, %s310_s13 }
  0x46   :  { %68 = vrot.lane.b32.xlu1 %v45_v7, %s313_s16 }
  0x48   :  { %64 = vrot.lane.b32.xlu0 %v45_v7, %s312_s15 }
  0x4a   :  { %75 = vrot.lane.b32.xlu1 %v67_v9, %s314_s17 }
  0x4c   :  { %70 = vrot.lane.b32.xlu0 %v67_v9, %s313_s16 }
  0x4e   :  { %81 = vrot.lane.b32.xlu1 %v67_v9, %s316_s19 }
  0x50   :  { %78 = vrot.lane.b32.xlu0 %v67_v9, %s315_s18 }
  0x52   :  { %87 = vrot.lane.b32.xlu1 %v67_v9, %s318_s21 }
  0x54   :  { %84 = vrot.lane.b32.xlu0 %v67_v9, %s317_s20 }
  0x56   :  { %93 = vrot.lane.b32.xlu1 %v67_v9, %s320_s23 }
  0x58   :  { %90 = vrot.lane.b32.xlu0 %v67_v9, %s319_s22 }
  0xa0   :  { %v141_v12 = vpop.permute.xlu1 %140 }
  0xa2   :  { %v127_v11 = vpop.permute.xlu0 %126 }
  0xa4   :  { %v144_v14 = vpop.permute.xlu1 %143 }
  0xa6   :  { %v138_v13 = vpop.permute.xlu0 %137 }
  0xa7   :  { %v153_v15 = vsel %vm152_vm0, %v127_v11, %v138_v13  ;;  %vm116_vm0 = vcmask 834560  }
  0xa8   :  { %v155_v16 = vsel %vm154_vm1, %v153_v15, %v141_v12  ;;  %v150_v19 = vpop.permute.xlu1 %149  ;;  %vm118_vm1 = vcmask 859136  }
  0xa9   :  { %v157_v17 = vsel %vm156_vm2, %v155_v16, %v144_v14  ;;  %vm120_vm2 = vcmask 883712  }
  0xaa   :  { %v147_v18 = vpop.permute.xlu0 %146 }
  0xab   :  { %v159_v20 = vsel %vm158_vm3, %v157_v17, %v147_v18  ;;  %vm122_vm3 = vcmask 908288  }
  0xac   :  { %v161_v21 = vsel %vm160_vm4, %v159_v20, %v150_v19  ;;  %v50_v24 = vpop.permute.xlu1 %49  ;;  %vm124_vm4 = vcmask 932864  }
  0xad   :  { %163 = vrot.lane.b32.xlu0 %v161_v21, %s321_s24 }
  0xae   :  { %v47_v22 = vpop.permute.xlu0 %46 }
  0xaf   :  { %v97_v26 = vsel %vm96_vm5, %v37_v23, %v47_v22  ;;  %vm166_vm5 = vcmask 957440  }
  0xb0   :  { %v99_v27 = vsel %vm98_vm6, %v97_v26, %v50_v24  ;;  %v56_v28 = vpop.permute.xlu1 %55  ;;  %vm178_vm6 = vcmask 1041408  }
  0xb2   :  { %v53_v25 = vpop.permute.xlu0 %52 }
  0xb3   :  { %v101_v30 = vsel %vm100_vm7, %v99_v27, %v53_v25  ;;  %vm179_vm7 = vcmask 52226  }
  0xb4   :  { %v103_v31 = vsel %vm102_vm8, %v101_v30, %v56_v28  ;;  %v62_v32 = vpop.permute.xlu1 %61  ;;  %vm180_vm8 = vmor %vm179_vm7, %vm178_vm6 }
  0xb6   :  { %v59_v29 = vpop.permute.xlu0 %58 }
  0xb7   :  { %v105_v34 = vsel %vm104_vm9, %v103_v31, %v59_v29 }
  0xb8   :  { %v107_v35 = vsel %vm106_vm10, %v105_v34, %v62_v32  ;;  %v69_v36 = vpop.permute.xlu1 %68 }
  0xba   :  { %v65_v33 = vpop.permute.xlu0 %64 }
  0xbb   :  { %v109_v38 = vsel %vm108_vm11, %v107_v35, %v65_v33 }
  0xbc   :  { %v76_v40 = vpop.permute.xlu1 %75 }
  0xbe   :  { %v71_v37 = vpop.permute.xlu0 %70 }
  0xbf   :  { %v73_v39 = vsel %vm72_vm12, %v69_v36, %v71_v37 }
  0xc0   :  { %v111_v41 = vsel %vm110_vm13, %v109_v38, %v73_v39  ;;  %v82_v45 = vpop.permute.xlu1 %81 }
  0xc1   :  { %v113_v42 = vsel %vm112_vm14, %v111_v41, %v76_v40 }
  0xc2   :  { %v79_v43 = vpop.permute.xlu0 %78 }
  0xc3   :  { %v115_v44 = vsel %vm114_vm15, %v113_v42, %v79_v43 }
  0xc4   :  { %v117_v46 = vsel %vm116_vm0, %v115_v44, %v82_v45  ;;  %v88_v49 = vpop.permute.xlu1 %87 }
  0xc6   :  { %v85_v47 = vpop.permute.xlu0 %84 }
  0xc7   :  { %v119_v48 = vsel %vm118_vm1, %v117_v46, %v85_v47 }
  0xc8   :  { %v121_v50 = vsel %vm120_vm2, %v119_v48, %v88_v49  ;;  %v94_v53 = vpop.permute.xlu1 %93 }
  0xca   :  { %v91_v51 = vpop.permute.xlu0 %90 }
  0xcb   :  { %v123_v52 = vsel %vm122_vm3, %v121_v50, %v91_v51 }
  0xcc   :  { %v125_v54 = vsel %vm124_vm4, %v123_v52, %v94_v53 }
 0x11f   :  { %v164_v55 = vpop.permute.xlu0 %163 }
 0x120   :  { %v167_v56 = vsel %vm166_vm5, %v125_v54, %v164_v55 }
 0x121   :  { %v169_v57 = vcombine.low %v167_v56, %v164_v55 }
 0x123   :  { %v176_v58 = vrot.slane %v169_v57, %v362_v5 }
 0x125   :  { %181 = vst.msk [vmem:[#allocation7] sm:$0xf] %vm180_vm8, %v176_v58 }
 0x126   :  { %280 = shalt.err (!%p277_p6)
}
 0x127   :  { %s281_s30 = scalar_lea.hbm %s381_s2, 64 }
 0x128   :  { %p282_p7 = scmp.ne.s32.totalorder %s381_s2, %s281_s30  ;;  %p285_p8 = scmp.lt.u32.totalorder %s281_s30, %s381_s2 }
 0x12a   :  { %p287_p9 = pnand %p285_p8, %p282_p7 }
 0x12c   :  { %290 = shalt.err (!%p287_p9)
}
 0x12d   :  { %191 = dma.vmem_to_hbm [thread:$0]  %s189_s26, 64, %s381_s2, [#allocation4]  }
 0x12e   :  { %295 = dma.done.wait [#allocation4], 64  }
 0x12f   :  { %296 = vsyncadd [#allocation4], 4294967232 }
 0x130   :  { %195 = vsyncpa [#allocation3], 1 }
 0x131   :  { %196 = vsyncpa [#allocation6], 1 }
 0x132   :  { %197 = vsyncpa [#allocation4], 1 }

</bundles_post_ra>
